<compile_context>
chip_gen: v5e
topology: v5e:2x2
jax: 0.10.0
libtpu: 0.0.40
codegen_flags: <defaults>
</compile_context>

<pallas_src>
import jax
import jax.numpy as jnp
from jax.experimental import pallas as pl
from jax.experimental.pallas import tpu as pltpu


def _identity_kernel(attn_ref, out_ref):
    # Pure pass-through: use_flag == False branch of AttentionAdapterBase.
    out_ref[...] = attn_ref[...]


def _pick_lane_width(n_elems: int):
    """Largest lane-dense (multiple-of-128) width that evenly divides N."""
    for c in (2048, 1024, 512, 256, 128):
        if n_elems % c == 0:
            return c
    return None


def _pick_row_tile(rows: int, lane: int, itemsize: int,
                   budget_bytes: int = 2 * 1024 * 1024):
    """Largest legal row tile (multiple of 8, or full extent) under budget."""
    cap = max(1, budget_bytes // (lane * itemsize))
    if rows <= cap:
        return rows                       # whole row extent (== full dim, legal)
    best = None
    t = 8
    while t <= cap:
        if rows % t == 0:
            best = t
        t += 8
    return best if best is not None else rows


def _identity_copy_pallas(attn_weights):
    """Tiled, lane-dense Pallas identity copy of attn_weights."""
    orig_shape = attn_weights.shape
    dtype = attn_weights.dtype
    itemsize = jnp.dtype(dtype).itemsize
    n_elems = attn_weights.size

    lane = _pick_lane_width(n_elems)
    if lane is None:
        # Fallback: N not divisible by 128 — present (B*H, Q*K) as one block
        # (trailing dims equal full array dims, so the layout is still legal).
        rows = orig_shape[0] * orig_shape[1]
        lane_dim = n_elems // rows
        x2d = attn_weights.reshape(rows, lane_dim)
        row_tile = rows
    else:
        rows = n_elems // lane
        lane_dim = lane
        x2d = attn_weights.reshape(rows, lane_dim)
        row_tile = _pick_row_tile(rows, lane_dim, itemsize)

    grid = (rows // row_tile,)
    block = (row_tile, lane_dim)

    out2d = pl.pallas_call(
        _identity_kernel,
        out_shape=jax.ShapeDtypeStruct((rows, lane_dim), dtype),
        grid_spec=pltpu.PrefetchScalarGridSpec(
            num_scalar_prefetch=0,
            grid=grid,
            in_specs=[pl.BlockSpec(block, lambda i: (i, 0))],
            out_specs=pl.BlockSpec(block, lambda i: (i, 0)),
        ),
        compiler_params=pltpu.CompilerParams(
            dimension_semantics=("parallel",),
            vmem_limit_bytes=32 * 1024 * 1024,
        ),
        cost_estimate=pl.CostEstimate(
            flops=0,
            transcendentals=0,
            bytes_accessed=2 * n_elems * itemsize,
        ),
        # Alias output onto the input buffer: with a donated input this makes
        # the "copy" free of extra HBM allocation; otherwise XLA inserts a
        # defensive copy and the result is still correct.
        input_output_aliases={0: 0},
    )(x2d)

    return out2d.reshape(orig_shape)


def attention_adapter_forward(attn_weights, use_flag: bool = False,
                              force_pallas_copy: bool = False):
    """JAX/Pallas equivalent of AttentionAdapterBase.forward.

    attn_weights: (B, H, Q, K) attention-weights array.
    use_flag: mirrors the module attribute; only False is implemented.
    force_pallas_copy: if True, route through the Pallas identity-copy kernel
      (useful when a pallas_call boundary is required for composition);
      otherwise the pass-through costs zero bytes of HBM traffic.
    """
    if use_flag:
        # TODO(synk): _forward is abstract (raises NotImplementedError) in the
        # reference module, so there is nothing to translate for use_flag=True.
        raise NotImplementedError("_forward is abstract in AttentionAdapterBase")

    if not force_pallas_copy:
        # Optimal path: identity => return the input, zero HBM traffic.
        return attn_weights

    return _identity_copy_pallas(attn_weights)


if __name__ == "__main__":
    key = jax.random.PRNGKey(0)
    B, H, Q, K = 2, 4, 8, 8  # small attention-weights shape (batch, heads, q, k)
    attn_weights = jax.random.normal(key, (B, H, Q, K), dtype=jnp.float32)

    # Zero-copy default path (matches module semantics exactly).
    out_fast = attention_adapter_forward(attn_weights, use_flag=False)
    out_fast = jax.block_until_ready(out_fast)
    assert out_fast.shape == attn_weights.shape
    assert out_fast.dtype == attn_weights.dtype
    assert bool(jnp.all(out_fast == attn_weights))

    # Pallas-boundary path (lane-dense tiled copy kernel).
    out_pallas = attention_adapter_forward(
        attn_weights, use_flag=False, force_pallas_copy=True)
    out_pallas = jax.block_until_ready(out_pallas)
    assert out_pallas.shape == attn_weights.shape
    assert out_pallas.dtype == attn_weights.dtype
    assert bool(jnp.all(out_pallas == attn_weights))

    print("KERNEL_OK")
</pallas_src>

<mosaic_0001>
module attributes {stable_mosaic.version = 11 : i64} {
  func.func @_identity_kernel(%arg0: i32, %arg1: memref<1x512xf32, #tpu.memory_space<vmem>>, %arg2: memref<1x512xf32, #tpu.memory_space<vmem>>) attributes {dimension_semantics = [#tpu.dimension_semantics<parallel>], iteration_bounds = array<i64: 1>, scalar_prefetch = 0 : i64, scratch_operands = 0 : i64, tpu.core_type = #tpu.core_type<tc>, window_params = [{transform_indices = @transform_0, window_bounds = array<i64: 1, 512>}, {transform_indices = @transform_1, window_bounds = array<i64: 1, 512>}]} {
    %c0 = arith.constant 0 : index
    %c0_0 = arith.constant 0 : index
    %0 = vector.load %arg1[%c0, %c0_0] : memref<1x512xf32, #tpu.memory_space<vmem>>, vector<1x512xf32>
    %c0_1 = arith.constant 0 : index
    %c0_2 = arith.constant 0 : index
    %1 = vector.load %arg2[%c0_1, %c0_2] : memref<1x512xf32, #tpu.memory_space<vmem>>, vector<1x512xf32>
    tpu.vector_store %arg2[%c0_1, %c0_2], %0 {strides = array<i32>} : memref<1x512xf32, #tpu.memory_space<vmem>>, vector<1x512xf32>,
    return
  }
  func.func @transform_0(%arg0: i32) -> (i32, i32) {
    %c0_i32 = arith.constant 0 : i32
    %c0_i32_0 = arith.constant 0 : i32
    return %arg0, %c0_i32 : i32, i32
  }
  func.func @transform_1(%arg0: i32) -> (i32, i32) {
    %c0_i32 = arith.constant 0 : i32
    %c0_i32_0 = arith.constant 0 : i32
    return %arg0, %c0_i32 : i32, i32
  }
}

</mosaic_0001>

<bundles_post_ra>
// kernel: tpu_custom_call.1
= control target key start
LH: loop header
LB: loop body
LE: loop exit
PB: predicated region body
PF: predicated region fallthrough
CT: control target
= control target key end

     0   :  { %6 = vsyncpa [#allocation3], 0  ;;  %s118_s0 = inlined_call_operand.hbm [shape: f32[1,512], index: 0, kind: input, shape index: {}, may-alias: {0,1}]   ;;  %s119_s1 = inlined_call_operand.hbm [shape: f32[1,512], index: 1, kind: output, shape index: {}, may-alias: {0,1}]  }
   0x1   :  { %7 = vsyncpa [#allocation4], 0  ;;  %s13_s8 = sshll.u32 %s118_s0, 4  ;;  %s100_s9 = smov [#allocation2]   ;;  %s14_s8 = int_to_ptr.hbm [resolvable:$true] %s13_s8 }
   0x2   :  { %s15_s10 = sshll.u32 %s100_s9, 4  ;;  %s16_s10 = int_to_ptr.vmem [resolvable:$true] %s15_s10 }
   0x3   :  { %18 = dma.hbm_to_vmem [thread:$0]  %s14_s8, 64, %s16_s10, [#allocation3]  }
   0x4   :  { %96 = dma.done.wait [#allocation3], 64  }
   0x5   :  { %97 = vsyncadd [#allocation3], 4294967232  ;;  %v24_v0 = vlaneseq  ;;  %s101_s11 = smov [#allocation5]   ;;  %s36_s15 = sshll.u32 %s119_s1, 4  ;;  %v23_v1 = vld [vmem:[#allocation2] sm:$0xf]  ;;  %s37_s15 = int_to_ptr.hbm [resolvable:$true] %s36_s15 }
   0x6   :  { %s34_s12 = sshll.u32 %s101_s11, 4  ;;  %s35_s12 = int_to_ptr.vmem [resolvable:$true] %s34_s12 }
   0x7   :  { %vm26_vm0 = vcmp.lt.s32.totalorder %v24_v0, 512 }
   0x8   :  { %28 = vst.msk [vmem:[#allocation5] sm:$0xf] %vm26_vm0, %v23_v1 }
   0x9   :  { %39 = dma.vmem_to_hbm [thread:$0]  %s35_s12, 64, %s37_s15, [#allocation4]  }
   0xa   :  { %98 = dma.done.wait [#allocation4], 64  }
   0xb   :  { %99 = vsyncadd [#allocation4], 4294967232 }
   0xc   :  { %44 = vsyncpa [#allocation3], 1 }
   0xd   :  { %45 = vsyncpa [#allocation4], 1 }

</bundles_post_ra>
